<compile_context>
chip_gen: v5e
topology: v5e:2x2
jax: 0.10.0
libtpu: 0.0.40
codegen_flags: <defaults>
</compile_context>

<pallas_src>
import functools

import jax
import jax.numpy as jnp
from jax.experimental import pallas as pl
from jax.experimental.pallas import tpu as pltpu


def _per_head_proj(w, heads, scale=1.0):
    """(D, D) nn.Linear weight -> (heads, heads*D, D).

    Block h holds scale * W.T on rows [h*D:(h+1)*D] and zeros elsewhere, so
    x[(.., E)] @ out[h]  ==  x[.., h*D:(h+1)*D] @ (scale * W.T)  — i.e. the shared per-head
    projection applied to head h's slice, with no in-kernel lane slicing.
    Total bytes equal the old block-diagonal (E, E) layout.
    """
    d = w.shape[0]
    eye = jnp.eye(heads, dtype=w.dtype)
    blk = eye[:, :, None, None] * (w.T * scale)[None, None, :, :]   # (h, g, d_in, d_out)
    return blk.reshape(heads, heads * d, d)


def _self_attention_kernel(q_ref, k_ref, v_ref, bias_ref,
                           wq_ref, wk_ref, wv_ref, wo_ref, bo_ref,
                           out_ref, attn_ref, *, heads):
    # q_ref: (TQ, E) bf16       k_ref / v_ref: (kv_len, E) bf16
    # bias_ref: (TQ, kv_len) bf16 additive mask bias (-1e20 where masked, 0 elsewhere)
    # wq/wk/wv_ref: (heads, E, D) bf16 per-head projection slabs (1/sqrt(E) folded into wq)
    # wo_ref: (heads, D, E) bf16 per-head rows of fc_out.weight.T   bo_ref: (1, E) f32
    # out_ref: (TQ, E) f32      attn_ref: (heads, TQ, kv_len) bf16 (or f32 if requested)
    bias = bias_ref[...].astype(jnp.float32)      # loaded once per grid step, shared by heads
    q = q_ref[...]
    k = k_ref[...]
    v = v_ref[...]
    dn = (((1,), (1,)), ((), ()))                 # contract last dims: (q,d) x (k,d) -> (q,k)

    def head_body(h, acc):
        # per-head projections: full lane-dense matmuls, head selected on the leading dim
        qh = jnp.dot(q, wq_ref[h], preferred_element_type=jnp.float32).astype(jnp.bfloat16)
        kh = jnp.dot(k, wk_ref[h], preferred_element_type=jnp.float32).astype(jnp.bfloat16)
        vh = jnp.dot(v, wv_ref[h], preferred_element_type=jnp.float32).astype(jnp.bfloat16)
        # scores (already scaled via wq) + additive mask bias; softmax in f32
        s = jax.lax.dot_general(qh, kh, dn, preferred_element_type=jnp.float32) + bias
        s = s - jnp.max(s, axis=-1, keepdims=True)
        e = jnp.exp(s)
        # approx reciprocal rides the otherwise-idle EUP slot; its error is far below the
        # bf16 rounding of the attn output (use approx=False if exact row sums are needed).
        p = e * pl.reciprocal(jnp.sum(e, axis=-1, keepdims=True), approx=True)
        attn_ref[h] = p.astype(attn_ref.dtype)
        # AV, then this head's slice of fc_out folded in: acc += (attn @ V_h) @ Wo_h
        ctx = jnp.dot(p.astype(jnp.bfloat16), vh, preferred_element_type=jnp.float32)
        return acc + jnp.dot(ctx.astype(jnp.bfloat16), wo_ref[h],
                             preferred_element_type=jnp.float32)

    acc = jnp.zeros(out_ref.shape, jnp.float32)
    if heads <= 8:
        # small head counts: static unroll gives the LLO scheduler full visibility
        for h in range(heads):
            acc = head_body(h, acc)
    else:
        # large head counts: fori_loop bounds vreg live ranges / code size
        acc = jax.lax.fori_loop(0, heads, head_body, acc)

    out_ref[...] = (acc + bo_ref[...]).astype(out_ref.dtype)


def self_attention_pallas(values, keys, query, mask, params, *, embed_size, heads,
                          attn_dtype=jnp.bfloat16):
    """values/keys/query: (N, seq, embed) f32; mask: (N, q_len, k_len), 0 => masked."""
    wq, wk, wv, wo, bo = params
    N, q_len, _ = query.shape
    k_len = keys.shape[1]
    v_len = values.shape[1]
    head_dim = embed_size // heads
    scale = 1.0 / (float(embed_size) ** 0.5)

    # Host-side parameter prep (free in XLA): per-head lane-dense projection slabs, fc_out
    # weight pre-transposed and split per head, softmax scale folded into Q weights.
    wq_ph = _per_head_proj(wq, heads, scale).astype(jnp.bfloat16)        # (H, E, D)
    wk_ph = _per_head_proj(wk, heads).astype(jnp.bfloat16)               # (H, E, D)
    wv_ph = _per_head_proj(wv, heads).astype(jnp.bfloat16)               # (H, E, D)
    wo_ph = wo.T.reshape(heads, head_dim, embed_size).astype(jnp.bfloat16)  # (H, D, E)
    bo2 = bo.reshape(1, embed_size).astype(jnp.float32)

    qb = query.astype(jnp.bfloat16)
    kb = keys.astype(jnp.bfloat16)
    vb = values.astype(jnp.bfloat16)
    # Additive mask bias precomputed in bf16: 2x smaller DMA than int32 mask and no
    # in-kernel where. (-1e20 + score == -1e20 exactly in f32, matching masked_fill.)
    bias = jnp.where(mask == 0, jnp.float32(-1e20), jnp.float32(0.0)).astype(jnp.bfloat16)

    # q-tile axis: enables both v7x TensorCores even at tiny batch; a loop on v5e/v6e.
    tq = q_len if q_len <= 128 else 128
    assert q_len % tq == 0, "q_len must tile evenly (pad on the host otherwise)"
    nq = q_len // tq

    kernel = functools.partial(_self_attention_kernel, heads=heads)

    out, attn = pl.pallas_call(
        kernel,
        out_shape=(
            jax.ShapeDtypeStruct((N, q_len, embed_size), jnp.float32),
            jax.ShapeDtypeStruct((N, heads, q_len, k_len), attn_dtype),
        ),
        grid=(N, nq),
        in_specs=[
            pl.BlockSpec((None, tq, embed_size), lambda n, t: (n, t, 0)),
            pl.BlockSpec((None, k_len, embed_size), lambda n, t: (n, 0, 0)),
            pl.BlockSpec((None, v_len, embed_size), lambda n, t: (n, 0, 0)),
            pl.BlockSpec((None, tq, k_len), lambda n, t: (n, t, 0)),
            pl.BlockSpec((heads, embed_size, head_dim), lambda n, t: (0, 0, 0)),
            pl.BlockSpec((heads, embed_size, head_dim), lambda n, t: (0, 0, 0)),
            pl.BlockSpec((heads, embed_size, head_dim), lambda n, t: (0, 0, 0)),
            pl.BlockSpec((heads, head_dim, embed_size), lambda n, t: (0, 0, 0)),
            pl.BlockSpec((1, embed_size), lambda n, t: (0, 0)),
        ],
        out_specs=(
            pl.BlockSpec((None, tq, embed_size), lambda n, t: (n, t, 0)),
            pl.BlockSpec((None, heads, tq, k_len), lambda n, t: (n, 0, t, 0)),
        ),
        compiler_params=pltpu.CompilerParams(
            dimension_semantics=("parallel", "parallel")),
    )(qb, kb, vb, bias, wq_ph, wk_ph, wv_ph, wo_ph, bo2)
    return out, attn


def self_attention_ref(values, keys, query, mask, params, *, embed_size, heads):
    """Pure-JAX f32 reference reproducing the PyTorch forward exactly."""
    wq, wk, wv, wo, bo = params
    N, q_len, _ = query.shape
    head_dim = embed_size // heads
    v = values.reshape(N, -1, heads, head_dim)
    k = keys.reshape(N, -1, heads, head_dim)
    q = query.reshape(N, -1, heads, head_dim)
    # nn.Linear (bias=False): x @ W.T
    v = jnp.einsum('nlhd,od->nlho', v, wv)
    k = jnp.einsum('nkhd,od->nkho', k, wk)
    q = jnp.einsum('nqhd,od->nqho', q, wq)
    att = jnp.einsum('nqhd,nkhd->nhqk', q, k)
    att = jnp.where(mask[:, None, :, :] == 0, jnp.float32(-1e20), att)
    att = jax.nn.softmax(att / (embed_size ** 0.5), axis=3)
    out = jnp.einsum('nhql,nlhd->nqhd', att, v).reshape(N, q_len, heads * head_dim)
    out = out @ wo.T + bo
    return out, att


if __name__ == "__main__":
    heads = 4
    embed_size = 32
    head_dim = embed_size // heads
    N = 2
    seq = 8

    key = jax.random.PRNGKey(0)
    k0, k1, k2, k3, k4, k5, k6, k7, k8 = jax.random.split(key, 9)

    # deterministic parameter init (nn.Linear-style scale)
    s_head = 1.0 / (head_dim ** 0.5)
    s_emb = 1.0 / (embed_size ** 0.5)
    wq = jax.random.uniform(k0, (head_dim, head_dim), jnp.float32, -s_head, s_head)
    wk = jax.random.uniform(k1, (head_dim, head_dim), jnp.float32, -s_head, s_head)
    wv = jax.random.uniform(k2, (head_dim, head_dim), jnp.float32, -s_head, s_head)
    wo = jax.random.uniform(k3, (embed_size, embed_size), jnp.float32, -s_emb, s_emb)
    bo = jax.random.uniform(k4, (embed_size,), jnp.float32, -s_emb, s_emb)
    params = (wq, wk, wv, wo, bo)

    values = jax.random.normal(k5, (N, seq, embed_size), jnp.float32)
    keys_in = jax.random.normal(k6, (N, seq, embed_size), jnp.float32)
    query = jax.random.normal(k7, (N, seq, embed_size), jnp.float32)

    # causal-style mask (N, q_len, k_len), 0 => masked (torch masked_fill(mask == 0, -1e20))
    causal = (jnp.arange(seq)[:, None] >= jnp.arange(seq)[None, :]).astype(jnp.int32)
    mask = jnp.broadcast_to(causal, (N, seq, seq))

    out, attn = self_attention_pallas(values, keys_in, query, mask, params,
                                      embed_size=embed_size, heads=heads)
    jax.block_until_ready((out, attn))

    out_ref, attn_ref = self_attention_ref(values, keys_in, query, mask, params,
                                           embed_size=embed_size, heads=heads)
    # Kernel runs bf16 operands on the MXU with f32 accumulation and returns bf16 attention
    # weights -> bf16-level tolerance against the pure-f32 reference.
    assert jnp.allclose(out, out_ref, atol=2e-2, rtol=2e-2)
    assert jnp.allclose(attn.astype(jnp.float32), attn_ref, atol=2e-2, rtol=2e-2)

    print("KERNEL_OK")
</pallas_src>

<mosaic_0001>
module attributes {stable_mosaic.version = 11 : i64} {
  func.func @_self_attention_kernel(%arg0: i32, %arg1: i32, %arg2: memref<1x8x32xbf16, #tpu.memory_space<vmem>>, %arg3: memref<1x8x32xbf16, #tpu.memory_space<vmem>>, %arg4: memref<1x8x32xbf16, #tpu.memory_space<vmem>>, %arg5: memref<1x8x8xbf16, #tpu.memory_space<vmem>>, %arg6: memref<4x32x8xbf16, #tpu.memory_space<vmem>>, %arg7: memref<4x32x8xbf16, #tpu.memory_space<vmem>>, %arg8: memref<4x32x8xbf16, #tpu.memory_space<vmem>>, %arg9: memref<4x8x32xbf16, #tpu.memory_space<vmem>>, %arg10: memref<1x32xf32, #tpu.memory_space<vmem>>, %arg11: memref<1x8x32xf32, #tpu.memory_space<vmem>>, %arg12: memref<1x4x8x8xbf16, #tpu.memory_space<vmem>>) attributes {dimension_semantics = [#tpu.dimension_semantics<parallel>, #tpu.dimension_semantics<parallel>], iteration_bounds = array<i64: 2, 1>, scalar_prefetch = 0 : i64, scratch_operands = 0 : i64, tpu.core_type = #tpu.core_type<tc>, window_params = [{transform_indices = @transform_0, window_bounds = array<i64: 1, 8, 32>}, {transform_indices = @transform_1, window_bounds = array<i64: 1, 8, 32>}, {transform_indices = @transform_2, window_bounds = array<i64: 1, 8, 32>}, {transform_indices = @transform_3, window_bounds = array<i64: 1, 8, 8>}, {pipeline_mode = #tpu.pipeline_mode<synchronous>, transform_indices = @transform_4, window_bounds = array<i64: 4, 32, 8>}, {pipeline_mode = #tpu.pipeline_mode<synchronous>, transform_indices = @transform_5, window_bounds = array<i64: 4, 32, 8>}, {pipeline_mode = #tpu.pipeline_mode<synchronous>, transform_indices = @transform_6, window_bounds = array<i64: 4, 32, 8>}, {pipeline_mode = #tpu.pipeline_mode<synchronous>, transform_indices = @transform_7, window_bounds = array<i64: 4, 8, 32>}, {pipeline_mode = #tpu.pipeline_mode<synchronous>, transform_indices = @transform_8, window_bounds = array<i64: 1, 32>}, {transform_indices = @transform_9, window_bounds = array<i64: 1, 8, 32>}, {transform_indices = @transform_10, window_bounds = array<i64: 1, 4, 8, 8>}]} {
    %c0 = arith.constant 0 : index
    %c0_0 = arith.constant 0 : index
    %c0_1 = arith.constant 0 : index
    %0 = vector.load %arg5[%c0, %c0_0, %c0_1] : memref<1x8x8xbf16, #tpu.memory_space<vmem>>, vector<1x8x8xbf16>
    %1 = vector.shape_cast %0 : vector<1x8x8xbf16> to vector<8x8xbf16>
    %2 = arith.extf %1 : vector<8x8xbf16> to vector<8x8xf32>
    %c0_2 = arith.constant 0 : index
    %c0_3 = arith.constant 0 : index
    %c0_4 = arith.constant 0 : index
    %3 = vector.load %arg2[%c0_2, %c0_3, %c0_4] : memref<1x8x32xbf16, #tpu.memory_space<vmem>>, vector<1x8x32xbf16>
    %4 = vector.shape_cast %3 : vector<1x8x32xbf16> to vector<8x32xbf16>
    %c0_5 = arith.constant 0 : index
    %c0_6 = arith.constant 0 : index
    %c0_7 = arith.constant 0 : index
    %5 = vector.load %arg3[%c0_5, %c0_6, %c0_7] : memref<1x8x32xbf16, #tpu.memory_space<vmem>>, vector<1x8x32xbf16>
    %6 = vector.shape_cast %5 : vector<1x8x32xbf16> to vector<8x32xbf16>
    %c0_8 = arith.constant 0 : index
    %c0_9 = arith.constant 0 : index
    %c0_10 = arith.constant 0 : index
    %7 = vector.load %arg4[%c0_8, %c0_9, %c0_10] : memref<1x8x32xbf16, #tpu.memory_space<vmem>>, vector<1x8x32xbf16>
    %8 = vector.shape_cast %7 : vector<1x8x32xbf16> to vector<8x32xbf16>
    %cst = arith.constant 0.000000e+00 : f32
    %9 = vector.broadcast %cst : f32 to vector<8x32xf32>
    %c0_11 = arith.constant 0 : index
    %c0_12 = arith.constant 0 : index
    %c0_13 = arith.constant 0 : index
    %10 = vector.load %arg6[%c0_11, %c0_12, %c0_13] : memref<4x32x8xbf16, #tpu.memory_space<vmem>>, vector<1x32x8xbf16>
    %11 = vector.shape_cast %10 : vector<1x32x8xbf16> to vector<32x8xbf16>
    %cst_14 = arith.constant dense<0.000000e+00> : vector<8x8xf32>
    %12 = tpu.matmul %4, %11, %cst_14 {dimension_numbers = #tpu.dot_dimension_numbers<[1], [0], [0], [1], [0, 0, 1, 1], [], []>} : vector<8x32xbf16>, vector<32x8xbf16>, vector<8x8xf32> -> vector<8x8xf32>
    %13 = arith.truncf %12 : vector<8x8xf32> to vector<8x8xbf16>
    %c0_15 = arith.constant 0 : index
    %c0_16 = arith.constant 0 : index
    %c0_17 = arith.constant 0 : index
    %14 = vector.load %arg7[%c0_15, %c0_16, %c0_17] : memref<4x32x8xbf16, #tpu.memory_space<vmem>>, vector<1x32x8xbf16>
    %15 = vector.shape_cast %14 : vector<1x32x8xbf16> to vector<32x8xbf16>
    %cst_18 = arith.constant dense<0.000000e+00> : vector<8x8xf32>
    %16 = tpu.matmul %6, %15, %cst_18 {dimension_numbers = #tpu.dot_dimension_numbers<[1], [0], [0], [1], [0, 0, 1, 1], [], []>} : vector<8x32xbf16>, vector<32x8xbf16>, vector<8x8xf32> -> vector<8x8xf32>
    %17 = arith.truncf %16 : vector<8x8xf32> to vector<8x8xbf16>
    %c0_19 = arith.constant 0 : index
    %c0_20 = arith.constant 0 : index
    %c0_21 = arith.constant 0 : index
    %18 = vector.load %arg8[%c0_19, %c0_20, %c0_21] : memref<4x32x8xbf16, #tpu.memory_space<vmem>>, vector<1x32x8xbf16>
    %19 = vector.shape_cast %18 : vector<1x32x8xbf16> to vector<32x8xbf16>
    %cst_22 = arith.constant dense<0.000000e+00> : vector<8x8xf32>
    %20 = tpu.matmul %8, %19, %cst_22 {dimension_numbers = #tpu.dot_dimension_numbers<[1], [0], [0], [1], [0, 0, 1, 1], [], []>} : vector<8x32xbf16>, vector<32x8xbf16>, vector<8x8xf32> -> vector<8x8xf32>
    %21 = arith.truncf %20 : vector<8x8xf32> to vector<8x8xbf16>
    %cst_23 = arith.constant dense<0.000000e+00> : vector<8x8xf32>
    %22 = tpu.matmul %13, %17, %cst_23 {dimension_numbers = #tpu.dot_dimension_numbers<[1], [1], [0], [0], [0, 0, 1, 0], [], []>} : vector<8x8xbf16>, vector<8x8xbf16>, vector<8x8xf32> -> vector<8x8xf32>
    %23 = arith.addf %22, %2 : vector<8x8xf32>
    %cst_24 = arith.constant dense<0xFF800000> : vector<8xf32>
    %24 = vector.multi_reduction <maximumf>, %23, %cst_24 [1] : vector<8x8xf32> to vector<8xf32>
    %25 = vector.shape_cast %24 : vector<8xf32> to vector<8x1xf32>
    %26 = vector.broadcast %25 : vector<8x1xf32> to vector<8x8xf32>
    %27 = arith.subf %23, %26 : vector<8x8xf32>
    %28 = math.exp %27 : vector<8x8xf32>
    %cst_25 = arith.constant dense<0.000000e+00> : vector<8xf32>
    %29 = vector.multi_reduction <add>, %28, %cst_25 [1] : vector<8x8xf32> to vector<8xf32>
    %30 = vector.shape_cast %29 : vector<8xf32> to vector<8x1xf32>
    %31 = tpu.reciprocal %30 {approx = true} : vector<8x1xf32> -> vector<8x1xf32>
    %32 = vector.broadcast %31 : vector<8x1xf32> to vector<8x8xf32>
    %33 = arith.mulf %28, %32 : vector<8x8xf32>
    %34 = arith.truncf %33 : vector<8x8xf32> to vector<8x8xbf16>
    %c0_26 = arith.constant 0 : index
    %c0_27 = arith.constant 0 : index
    %c0_28 = arith.constant 0 : index
    %c0_29 = arith.constant 0 : index
    %35 = vector.load %arg12[%c0_26, %c0_27, %c0_28, %c0_29] : memref<1x4x8x8xbf16, #tpu.memory_space<vmem>>, vector<1x1x8x8xbf16>
    %36 = vector.shape_cast %35 : vector<1x1x8x8xbf16> to vector<8x8xbf16>
    %37 = vector.shape_cast %34 : vector<8x8xbf16> to vector<1x1x8x8xbf16>
    tpu.vector_store %arg12[%c0_26, %c0_27, %c0_28, %c0_29], %37 {strides = array<i32>} : memref<1x4x8x8xbf16, #tpu.memory_space<vmem>>, vector<1x1x8x8xbf16>,
    %38 = arith.truncf %33 : vector<8x8xf32> to vector<8x8xbf16>
    %cst_30 = arith.constant dense<0.000000e+00> : vector<8x8xf32>
    %39 = tpu.matmul %38, %21, %cst_30 {dimension_numbers = #tpu.dot_dimension_numbers<[1], [0], [0], [1], [0, 0, 1, 1], [], []>} : vector<8x8xbf16>, vector<8x8xbf16>, vector<8x8xf32> -> vector<8x8xf32>
    %40 = arith.truncf %39 : vector<8x8xf32> to vector<8x8xbf16>
    %c0_31 = arith.constant 0 : index
    %c0_32 = arith.constant 0 : index
    %c0_33 = arith.constant 0 : index
    %41 = vector.load %arg9[%c0_31, %c0_32, %c0_33] : memref<4x8x32xbf16, #tpu.memory_space<vmem>>, vector<1x8x32xbf16>
    %42 = vector.shape_cast %41 : vector<1x8x32xbf16> to vector<8x32xbf16>
    %cst_34 = arith.constant dense<0.000000e+00> : vector<8x32xf32>
    %43 = tpu.matmul %40, %42, %cst_34 {dimension_numbers = #tpu.dot_dimension_numbers<[1], [0], [0], [1], [0, 0, 1, 1], [], []>} : vector<8x8xbf16>, vector<8x32xbf16>, vector<8x32xf32> -> vector<8x32xf32>
    %44 = arith.addf %9, %43 : vector<8x32xf32>
    %c1 = arith.constant 1 : index
    %c0_35 = arith.constant 0 : index
    %c0_36 = arith.constant 0 : index
    %45 = vector.load %arg6[%c1, %c0_35, %c0_36] : memref<4x32x8xbf16, #tpu.memory_space<vmem>>, vector<1x32x8xbf16>
    %46 = vector.shape_cast %45 : vector<1x32x8xbf16> to vector<32x8xbf16>
    %cst_37 = arith.constant dense<0.000000e+00> : vector<8x8xf32>
    %47 = tpu.matmul %4, %46, %cst_37 {dimension_numbers = #tpu.dot_dimension_numbers<[1], [0], [0], [1], [0, 0, 1, 1], [], []>} : vector<8x32xbf16>, vector<32x8xbf16>, vector<8x8xf32> -> vector<8x8xf32>
    %48 = arith.truncf %47 : vector<8x8xf32> to vector<8x8xbf16>
    %c1_38 = arith.constant 1 : index
    %c0_39 = arith.constant 0 : index
    %c0_40 = arith.constant 0 : index
    %49 = vector.load %arg7[%c1_38, %c0_39, %c0_40] : memref<4x32x8xbf16, #tpu.memory_space<vmem>>, vector<1x32x8xbf16>
    %50 = vector.shape_cast %49 : vector<1x32x8xbf16> to vector<32x8xbf16>
    %cst_41 = arith.constant dense<0.000000e+00> : vector<8x8xf32>
    %51 = tpu.matmul %6, %50, %cst_41 {dimension_numbers = #tpu.dot_dimension_numbers<[1], [0], [0], [1], [0, 0, 1, 1], [], []>} : vector<8x32xbf16>, vector<32x8xbf16>, vector<8x8xf32> -> vector<8x8xf32>
    %52 = arith.truncf %51 : vector<8x8xf32> to vector<8x8xbf16>
    %c1_42 = arith.constant 1 : index
    %c0_43 = arith.constant 0 : index
    %c0_44 = arith.constant 0 : index
    %53 = vector.load %arg8[%c1_42, %c0_43, %c0_44] : memref<4x32x8xbf16, #tpu.memory_space<vmem>>, vector<1x32x8xbf16>
    %54 = vector.shape_cast %53 : vector<1x32x8xbf16> to vector<32x8xbf16>
    %cst_45 = arith.constant dense<0.000000e+00> : vector<8x8xf32>
    %55 = tpu.matmul %8, %54, %cst_45 {dimension_numbers = #tpu.dot_dimension_numbers<[1], [0], [0], [1], [0, 0, 1, 1], [], []>} : vector<8x32xbf16>, vector<32x8xbf16>, vector<8x8xf32> -> vector<8x8xf32>
    %56 = arith.truncf %55 : vector<8x8xf32> to vector<8x8xbf16>
    %cst_46 = arith.constant dense<0.000000e+00> : vector<8x8xf32>
    %57 = tpu.matmul %48, %52, %cst_46 {dimension_numbers = #tpu.dot_dimension_numbers<[1], [1], [0], [0], [0, 0, 1, 0], [], []>} : vector<8x8xbf16>, vector<8x8xbf16>, vector<8x8xf32> -> vector<8x8xf32>
    %58 = arith.addf %57, %2 : vector<8x8xf32>
    %cst_47 = arith.constant dense<0xFF800000> : vector<8xf32>
    %59 = vector.multi_reduction <maximumf>, %58, %cst_47 [1] : vector<8x8xf32> to vector<8xf32>
    %60 = vector.shape_cast %59 : vector<8xf32> to vector<8x1xf32>
    %61 = vector.broadcast %60 : vector<8x1xf32> to vector<8x8xf32>
    %62 = arith.subf %58, %61 : vector<8x8xf32>
    %63 = math.exp %62 : vector<8x8xf32>
    %cst_48 = arith.constant dense<0.000000e+00> : vector<8xf32>
    %64 = vector.multi_reduction <add>, %63, %cst_48 [1] : vector<8x8xf32> to vector<8xf32>
    %65 = vector.shape_cast %64 : vector<8xf32> to vector<8x1xf32>
    %66 = tpu.reciprocal %65 {approx = true} : vector<8x1xf32> -> vector<8x1xf32>
    %67 = vector.broadcast %66 : vector<8x1xf32> to vector<8x8xf32>
    %68 = arith.mulf %63, %67 : vector<8x8xf32>
    %69 = arith.truncf %68 : vector<8x8xf32> to vector<8x8xbf16>
    %c0_49 = arith.constant 0 : index
    %c1_50 = arith.constant 1 : index
    %c0_51 = arith.constant 0 : index
    %c0_52 = arith.constant 0 : index
    %70 = vector.load %arg12[%c0_49, %c1_50, %c0_51, %c0_52] : memref<1x4x8x8xbf16, #tpu.memory_space<vmem>>, vector<1x1x8x8xbf16>
    %71 = vector.shape_cast %70 : vector<1x1x8x8xbf16> to vector<8x8xbf16>
    %72 = vector.shape_cast %69 : vector<8x8xbf16> to vector<1x1x8x8xbf16>
    tpu.vector_store %arg12[%c0_49, %c1_50, %c0_51, %c0_52], %72 {strides = array<i32>} : memref<1x4x8x8xbf16, #tpu.memory_space<vmem>>, vector<1x1x8x8xbf16>,
    %73 = arith.truncf %68 : vector<8x8xf32> to vector<8x8xbf16>
    %cst_53 = arith.constant dense<0.000000e+00> : vector<8x8xf32>
    %74 = tpu.matmul %73, %56, %cst_53 {dimension_numbers = #tpu.dot_dimension_numbers<[1], [0], [0], [1], [0, 0, 1, 1], [], []>} : vector<8x8xbf16>, vector<8x8xbf16>, vector<8x8xf32> -> vector<8x8xf32>
    %75 = arith.truncf %74 : vector<8x8xf32> to vector<8x8xbf16>
    %c1_54 = arith.constant 1 : index
    %c0_55 = arith.constant 0 : index
    %c0_56 = arith.constant 0 : index
    %76 = vector.load %arg9[%c1_54, %c0_55, %c0_56] : memref<4x8x32xbf16, #tpu.memory_space<vmem>>, vector<1x8x32xbf16>
    %77 = vector.shape_cast %76 : vector<1x8x32xbf16> to vector<8x32xbf16>
    %cst_57 = arith.constant dense<0.000000e+00> : vector<8x32xf32>
    %78 = tpu.matmul %75, %77, %cst_57 {dimension_numbers = #tpu.dot_dimension_numbers<[1], [0], [0], [1], [0, 0, 1, 1], [], []>} : vector<8x8xbf16>, vector<8x32xbf16>, vector<8x32xf32> -> vector<8x32xf32>
    %79 = arith.addf %44, %78 : vector<8x32xf32>
    %c2 = arith.constant 2 : index
    %c0_58 = arith.constant 0 : index
    %c0_59 = arith.constant 0 : index
    %80 = vector.load %arg6[%c2, %c0_58, %c0_59] : memref<4x32x8xbf16, #tpu.memory_space<vmem>>, vector<1x32x8xbf16>
    %81 = vector.shape_cast %80 : vector<1x32x8xbf16> to vector<32x8xbf16>
    %cst_60 = arith.constant dense<0.000000e+00> : vector<8x8xf32>
    %82 = tpu.matmul %4, %81, %cst_60 {dimension_numbers = #tpu.dot_dimension_numbers<[1], [0], [0], [1], [0, 0, 1, 1], [], []>} : vector<8x32xbf16>, vector<32x8xbf16>, vector<8x8xf32> -> vector<8x8xf32>
    %83 = arith.truncf %82 : vector<8x8xf32> to vector<8x8xbf16>
    %c2_61 = arith.constant 2 : index
    %c0_62 = arith.constant 0 : index
    %c0_63 = arith.constant 0 : index
    %84 = vector.load %arg7[%c2_61, %c0_62, %c0_63] : memref<4x32x8xbf16, #tpu.memory_space<vmem>>, vector<1x32x8xbf16>
    %85 = vector.shape_cast %84 : vector<1x32x8xbf16> to vector<32x8xbf16>
    %cst_64 = arith.constant dense<0.000000e+00> : vector<8x8xf32>
    %86 = tpu.matmul %6, %85, %cst_64 {dimension_numbers = #tpu.dot_dimension_numbers<[1], [0], [0], [1], [0, 0, 1, 1], [], []>} : vector<8x32xbf16>, vector<32x8xbf16>, vector<8x8xf32> -> vector<8x8xf32>
    %87 = arith.truncf %86 : vector<8x8xf32> to vector<8x8xbf16>
    %c2_65 = arith.constant 2 : index
    %c0_66 = arith.constant 0 : index
    %c0_67 = arith.constant 0 : index
    %88 = vector.load %arg8[%c2_65, %c0_66, %c0_67] : memref<4x32x8xbf16, #tpu.memory_space<vmem>>, vector<1x32x8xbf16>
    %89 = vector.shape_cast %88 : vector<1x32x8xbf16> to vector<32x8xbf16>
    %cst_68 = arith.constant dense<0.000000e+00> : vector<8x8xf32>
    %90 = tpu.matmul %8, %89, %cst_68 {dimension_numbers = #tpu.dot_dimension_numbers<[1], [0], [0], [1], [0, 0, 1, 1], [], []>} : vector<8x32xbf16>, vector<32x8xbf16>, vector<8x8xf32> -> vector<8x8xf32>
    %91 = arith.truncf %90 : vector<8x8xf32> to vector<8x8xbf16>
    %cst_69 = arith.constant dense<0.000000e+00> : vector<8x8xf32>
    %92 = tpu.matmul %83, %87, %cst_69 {dimension_numbers = #tpu.dot_dimension_numbers<[1], [1], [0], [0], [0, 0, 1, 0], [], []>} : vector<8x8xbf16>, vector<8x8xbf16>, vector<8x8xf32> -> vector<8x8xf32>
    %93 = arith.addf %92, %2 : vector<8x8xf32>
    %cst_70 = arith.constant dense<0xFF800000> : vector<8xf32>
    %94 = vector.multi_reduction <maximumf>, %93, %cst_70 [1] : vector<8x8xf32> to vector<8xf32>
    %95 = vector.shape_cast %94 : vector<8xf32> to vector<8x1xf32>
    %96 = vector.broadcast %95 : vector<8x1xf32> to vector<8x8xf32>
    %97 = arith.subf %93, %96 : vector<8x8xf32>
    %98 = math.exp %97 : vector<8x8xf32>
    %cst_71 = arith.constant dense<0.000000e+00> : vector<8xf32>
    %99 = vector.multi_reduction <add>, %98, %cst_71 [1] : vector<8x8xf32> to vector<8xf32>
    %100 = vector.shape_cast %99 : vector<8xf32> to vector<8x1xf32>
    %101 = tpu.reciprocal %100 {approx = true} : vector<8x1xf32> -> vector<8x1xf32>
    %102 = vector.broadcast %101 : vector<8x1xf32> to vector<8x8xf32>
    %103 = arith.mulf %98, %102 : vector<8x8xf32>
    %104 = arith.truncf %103 : vector<8x8xf32> to vector<8x8xbf16>
    %c0_72 = arith.constant 0 : index
    %c2_73 = arith.constant 2 : index
    %c0_74 = arith.constant 0 : index
    %c0_75 = arith.constant 0 : index
    %105 = vector.load %arg12[%c0_72, %c2_73, %c0_74, %c0_75] : memref<1x4x8x8xbf16, #tpu.memory_space<vmem>>, vector<1x1x8x8xbf16>
    %106 = vector.shape_cast %105 : vector<1x1x8x8xbf16> to vector<8x8xbf16>
    %107 = vector.shape_cast %104 : vector<8x8xbf16> to vector<1x1x8x8xbf16>
    tpu.vector_store %arg12[%c0_72, %c2_73, %c0_74, %c0_75], %107 {strides = array<i32>} : memref<1x4x8x8xbf16, #tpu.memory_space<vmem>>, vector<1x1x8x8xbf16>,
    %108 = arith.truncf %103 : vector<8x8xf32> to vector<8x8xbf16>
    %cst_76 = arith.constant dense<0.000000e+00> : vector<8x8xf32>
    %109 = tpu.matmul %108, %91, %cst_76 {dimension_numbers = #tpu.dot_dimension_numbers<[1], [0], [0], [1], [0, 0, 1, 1], [], []>} : vector<8x8xbf16>, vector<8x8xbf16>, vector<8x8xf32> -> vector<8x8xf32>
    %110 = arith.truncf %109 : vector<8x8xf32> to vector<8x8xbf16>
    %c2_77 = arith.constant 2 : index
    %c0_78 = arith.constant 0 : index
    %c0_79 = arith.constant 0 : index
    %111 = vector.load %arg9[%c2_77, %c0_78, %c0_79] : memref<4x8x32xbf16, #tpu.memory_space<vmem>>, vector<1x8x32xbf16>
    %112 = vector.shape_cast %111 : vector<1x8x32xbf16> to vector<8x32xbf16>
    %cst_80 = arith.constant dense<0.000000e+00> : vector<8x32xf32>
    %113 = tpu.matmul %110, %112, %cst_80 {dimension_numbers = #tpu.dot_dimension_numbers<[1], [0], [0], [1], [0, 0, 1, 1], [], []>} : vector<8x8xbf16>, vector<8x32xbf16>, vector<8x32xf32> -> vector<8x32xf32>
    %114 = arith.addf %79, %113 : vector<8x32xf32>
    %c3 = arith.constant 3 : index
    %c0_81 = arith.constant 0 : index
    %c0_82 = arith.constant 0 : index
    %115 = vector.load %arg6[%c3, %c0_81, %c0_82] : memref<4x32x8xbf16, #tpu.memory_space<vmem>>, vector<1x32x8xbf16>
    %116 = vector.shape_cast %115 : vector<1x32x8xbf16> to vector<32x8xbf16>
    %cst_83 = arith.constant dense<0.000000e+00> : vector<8x8xf32>
    %117 = tpu.matmul %4, %116, %cst_83 {dimension_numbers = #tpu.dot_dimension_numbers<[1], [0], [0], [1], [0, 0, 1, 1], [], []>} : vector<8x32xbf16>, vector<32x8xbf16>, vector<8x8xf32> -> vector<8x8xf32>
    %118 = arith.truncf %117 : vector<8x8xf32> to vector<8x8xbf16>
    %c3_84 = arith.constant 3 : index
    %c0_85 = arith.constant 0 : index
    %c0_86 = arith.constant 0 : index
    %119 = vector.load %arg7[%c3_84, %c0_85, %c0_86] : memref<4x32x8xbf16, #tpu.memory_space<vmem>>, vector<1x32x8xbf16>
    %120 = vector.shape_cast %119 : vector<1x32x8xbf16> to vector<32x8xbf16>
    %cst_87 = arith.constant dense<0.000000e+00> : vector<8x8xf32>
    %121 = tpu.matmul %6, %120, %cst_87 {dimension_numbers = #tpu.dot_dimension_numbers<[1], [0], [0], [1], [0, 0, 1, 1], [], []>} : vector<8x32xbf16>, vector<32x8xbf16>, vector<8x8xf32> -> vector<8x8xf32>
    %122 = arith.truncf %121 : vector<8x8xf32> to vector<8x8xbf16>
    %c3_88 = arith.constant 3 : index
    %c0_89 = arith.constant 0 : index
    %c0_90 = arith.constant 0 : index
    %123 = vector.load %arg8[%c3_88, %c0_89, %c0_90] : memref<4x32x8xbf16, #tpu.memory_space<vmem>>, vector<1x32x8xbf16>
    %124 = vector.shape_cast %123 : vector<1x32x8xbf16> to vector<32x8xbf16>
    %cst_91 = arith.constant dense<0.000000e+00> : vector<8x8xf32>
    %125 = tpu.matmul %8, %124, %cst_91 {dimension_numbers = #tpu.dot_dimension_numbers<[1], [0], [0], [1], [0, 0, 1, 1], [], []>} : vector<8x32xbf16>, vector<32x8xbf16>, vector<8x8xf32> -> vector<8x8xf32>
    %126 = arith.truncf %125 : vector<8x8xf32> to vector<8x8xbf16>
    %cst_92 = arith.constant dense<0.000000e+00> : vector<8x8xf32>
    %127 = tpu.matmul %118, %122, %cst_92 {dimension_numbers = #tpu.dot_dimension_numbers<[1], [1], [0], [0], [0, 0, 1, 0], [], []>} : vector<8x8xbf16>, vector<8x8xbf16>, vector<8x8xf32> -> vector<8x8xf32>
    %128 = arith.addf %127, %2 : vector<8x8xf32>
    %cst_93 = arith.constant dense<0xFF800000> : vector<8xf32>
    %129 = vector.multi_reduction <maximumf>, %128, %cst_93 [1] : vector<8x8xf32> to vector<8xf32>
    %130 = vector.shape_cast %129 : vector<8xf32> to vector<8x1xf32>
    %131 = vector.broadcast %130 : vector<8x1xf32> to vector<8x8xf32>
    %132 = arith.subf %128, %131 : vector<8x8xf32>
    %133 = math.exp %132 : vector<8x8xf32>
    %cst_94 = arith.constant dense<0.000000e+00> : vector<8xf32>
    %134 = vector.multi_reduction <add>, %133, %cst_94 [1] : vector<8x8xf32> to vector<8xf32>
    %135 = vector.shape_cast %134 : vector<8xf32> to vector<8x1xf32>
    %136 = tpu.reciprocal %135 {approx = true} : vector<8x1xf32> -> vector<8x1xf32>
    %137 = vector.broadcast %136 : vector<8x1xf32> to vector<8x8xf32>
    %138 = arith.mulf %133, %137 : vector<8x8xf32>
    %139 = arith.truncf %138 : vector<8x8xf32> to vector<8x8xbf16>
    %c0_95 = arith.constant 0 : index
    %c3_96 = arith.constant 3 : index
    %c0_97 = arith.constant 0 : index
    %c0_98 = arith.constant 0 : index
    %140 = vector.load %arg12[%c0_95, %c3_96, %c0_97, %c0_98] : memref<1x4x8x8xbf16, #tpu.memory_space<vmem>>, vector<1x1x8x8xbf16>
    %141 = vector.shape_cast %140 : vector<1x1x8x8xbf16> to vector<8x8xbf16>
    %142 = vector.shape_cast %139 : vector<8x8xbf16> to vector<1x1x8x8xbf16>
    tpu.vector_store %arg12[%c0_95, %c3_96, %c0_97, %c0_98], %142 {strides = array<i32>} : memref<1x4x8x8xbf16, #tpu.memory_space<vmem>>, vector<1x1x8x8xbf16>,
    %143 = arith.truncf %138 : vector<8x8xf32> to vector<8x8xbf16>
    %cst_99 = arith.constant dense<0.000000e+00> : vector<8x8xf32>
    %144 = tpu.matmul %143, %126, %cst_99 {dimension_numbers = #tpu.dot_dimension_numbers<[1], [0], [0], [1], [0, 0, 1, 1], [], []>} : vector<8x8xbf16>, vector<8x8xbf16>, vector<8x8xf32> -> vector<8x8xf32>
    %145 = arith.truncf %144 : vector<8x8xf32> to vector<8x8xbf16>
    %c3_100 = arith.constant 3 : index
    %c0_101 = arith.constant 0 : index
    %c0_102 = arith.constant 0 : index
    %146 = vector.load %arg9[%c3_100, %c0_101, %c0_102] : memref<4x8x32xbf16, #tpu.memory_space<vmem>>, vector<1x8x32xbf16>
    %147 = vector.shape_cast %146 : vector<1x8x32xbf16> to vector<8x32xbf16>
    %cst_103 = arith.constant dense<0.000000e+00> : vector<8x32xf32>
    %148 = tpu.matmul %145, %147, %cst_103 {dimension_numbers = #tpu.dot_dimension_numbers<[1], [0], [0], [1], [0, 0, 1, 1], [], []>} : vector<8x8xbf16>, vector<8x32xbf16>, vector<8x32xf32> -> vector<8x32xf32>
    %149 = arith.addf %114, %148 : vector<8x32xf32>
    %c0_104 = arith.constant 0 : index
    %c0_105 = arith.constant 0 : index
    %150 = vector.load %arg10[%c0_104, %c0_105] : memref<1x32xf32, #tpu.memory_space<vmem>>, vector<1x32xf32>
    %151 = vector.broadcast %150 : vector<1x32xf32> to vector<8x32xf32>
    %152 = arith.addf %149, %151 : vector<8x32xf32>
    %c0_106 = arith.constant 0 : index
    %c0_107 = arith.constant 0 : index
    %c0_108 = arith.constant 0 : index
    %153 = vector.load %arg11[%c0_106, %c0_107, %c0_108] : memref<1x8x32xf32, #tpu.memory_space<vmem>>, vector<1x8x32xf32>
    %154 = vector.shape_cast %153 : vector<1x8x32xf32> to vector<8x32xf32>
    %155 = vector.shape_cast %152 : vector<8x32xf32> to vector<1x8x32xf32>
    tpu.vector_store %arg11[%c0_106, %c0_107, %c0_108], %155 {strides = array<i32>} : memref<1x8x32xf32, #tpu.memory_space<vmem>>, vector<1x8x32xf32>,
    return
  }
  func.func @transform_0(%arg0: i32, %arg1: i32) -> (i32, i32, i32) {
    %c0_i32 = arith.constant 0 : i32
    %c0_i32_0 = arith.constant 0 : i32
    return %arg0, %arg1, %c0_i32 : i32, i32, i32
  }
  func.func @transform_1(%arg0: i32, %arg1: i32) -> (i32, i32, i32) {
    %c0_i32 = arith.constant 0 : i32
    %c0_i32_0 = arith.constant 0 : i32
    %c0_i32_1 = arith.constant 0 : i32
    return %arg0, %c0_i32, %c0_i32_0 : i32, i32, i32
  }
  func.func @transform_2(%arg0: i32, %arg1: i32) -> (i32, i32, i32) {
    %c0_i32 = arith.constant 0 : i32
    %c0_i32_0 = arith.constant 0 : i32
    %c0_i32_1 = arith.constant 0 : i32
    return %arg0, %c0_i32, %c0_i32_0 : i32, i32, i32
  }
  func.func @transform_3(%arg0: i32, %arg1: i32) -> (i32, i32, i32) {
    %c0_i32 = arith.constant 0 : i32
    %c0_i32_0 = arith.constant 0 : i32
    return %arg0, %arg1, %c0_i32 : i32, i32, i32
  }
  func.func @transform_4(%arg0: i32, %arg1: i32) -> (i32, i32, i32) {
    %c0_i32 = arith.constant 0 : i32
    %c0_i32_0 = arith.constant 0 : i32
    %c0_i32_1 = arith.constant 0 : i32
    %c0_i32_2 = arith.constant 0 : i32
    return %c0_i32, %c0_i32_0, %c0_i32_1 : i32, i32, i32
  }
  func.func @transform_5(%arg0: i32, %arg1: i32) -> (i32, i32, i32) {
    %c0_i32 = arith.constant 0 : i32
    %c0_i32_0 = arith.constant 0 : i32
    %c0_i32_1 = arith.constant 0 : i32
    %c0_i32_2 = arith.constant 0 : i32
    return %c0_i32, %c0_i32_0, %c0_i32_1 : i32, i32, i32
  }
  func.func @transform_6(%arg0: i32, %arg1: i32) -> (i32, i32, i32) {
    %c0_i32 = arith.constant 0 : i32
    %c0_i32_0 = arith.constant 0 : i32
    %c0_i32_1 = arith.constant 0 : i32
    %c0_i32_2 = arith.constant 0 : i32
    return %c0_i32, %c0_i32_0, %c0_i32_1 : i32, i32, i32
  }
  func.func @transform_7(%arg0: i32, %arg1: i32) -> (i32, i32, i32) {
    %c0_i32 = arith.constant 0 : i32
    %c0_i32_0 = arith.constant 0 : i32
    %c0_i32_1 = arith.constant 0 : i32
    %c0_i32_2 = arith.constant 0 : i32
    return %c0_i32, %c0_i32_0, %c0_i32_1 : i32, i32, i32
  }
  func.func @transform_8(%arg0: i32, %arg1: i32) -> (i32, i32) {
    %c0_i32 = arith.constant 0 : i32
    %c0_i32_0 = arith.constant 0 : i32
    %c0_i32_1 = arith.constant 0 : i32
    return %c0_i32, %c0_i32_0 : i32, i32
  }
  func.func @transform_9(%arg0: i32, %arg1: i32) -> (i32, i32, i32) {
    %c0_i32 = arith.constant 0 : i32
    %c0_i32_0 = arith.constant 0 : i32
    return %arg0, %arg1, %c0_i32 : i32, i32, i32
  }
  func.func @transform_10(%arg0: i32, %arg1: i32) -> (i32, i32, i32, i32) {
    %c0_i32 = arith.constant 0 : i32
    %c0_i32_0 = arith.constant 0 : i32
    %c0_i32_1 = arith.constant 0 : i32
    return %arg0, %c0_i32, %arg1, %c0_i32_0 : i32, i32, i32, i32
  }
}

</mosaic_0001>

<bundles_post_ra>
// kernel: tpu_custom_call.1
= control target key start
LH: loop header
LB: loop body
LE: loop exit
PB: predicated region body
PF: predicated region fallthrough
CT: control target
= control target key end

     0   :  { %s2088_s0 = inlined_call_operand.vmem [shape: bf16[2,8,32], index: 0, kind: input, shape index: {}]   ;;  %s2089_s1 = inlined_call_operand.vmem [shape: bf16[2,8,32], index: 1, kind: input, shape index: {}]   ;;  %s2090_s2 = inlined_call_operand.vmem [shape: bf16[2,8,32], index: 2, kind: input, shape index: {}]   ;;  %s2091_s3 = inlined_call_operand.vmem [shape: bf16[2,8,8], index: 3, kind: input, shape index: {}]   ;;  %s2092_s4 = inlined_call_operand.vmem [shape: bf16[4,32,8], index: 4, kind: input, shape index: {}]   ;;  %s2093_s5 = inlined_call_operand.vmem [shape: bf16[4,32,8], index: 5, kind: input, shape index: {}]   ;;  %s2094_s6 = inlined_call_operand.vmem [shape: bf16[4,32,8], index: 6, kind: input, shape index: {}]   ;;  %s2095_s7 = inlined_call_operand.vmem [shape: bf16[4,8,32], index: 7, kind: input, shape index: {}]   ;;  %s2096_s8 = inlined_call_operand.vmem [shape: f32[1,32], index: 8, kind: input, shape index: {}]   ;;  %s2097_s9 = inlined_call_operand.hbm [shape: f32[2,8,32], index: 9, kind: output, shape index: {0}]   ;;  %s2098_s10 = inlined_call_operand.hbm [shape: bf16[2,4,8,8], index: 10, kind: output, shape index: {1}]  }
   0x1   :  { %2101 = sst [smem:[#allocation10_spill]] %s2088_s0 }
   0x2   :  { %2102 = sst [smem:[#allocation11_spill]] %s2089_s1 }
   0x3   :  { %2103 = sst [smem:[#allocation12_spill]] %s2090_s2 }
   0x4   :  { %2104 = sst [smem:[#allocation13_spill]] %s2091_s3 }
   0x5   :  { %16 = vsyncpa [#allocation3], 0 }
   0x6   :  { %18 = vsyncpa [#allocation3 + $0x1], 0 }
   0x7   :  { %19 = vsyncpa [#allocation5], 0 }
   0x8   :  { %21 = vsyncpa [#allocation5 + $0x1], 0  ;;  %s1783_s13 = smov 0   ;;  %s1785_s14 = smov 0  }
   0x9   :  { %s1787_s15 = smov 0   ;;  %s1789_s16 = smov 0  }
   0xa   :  { %s1791_s17 = smov 0   ;;  %s1793_s18 = smov 0  }
   0xb LB: > { %2105 = sst [smem:[#allocation8_spill]] %s1720_s17  ;;  %s1330_s19 = sadd.s32 4294967295, %s1724_s18   ;;  %s1724_s18 = sphi %s1793_s18, %s27_s18   ;;  %s1720_s17 = sphi %s1791_s17, %s2114_s17   ;;  %s1716_s16 = sphi %s1789_s16, %s2113_s16   ;;  %s1712_s15 = sphi %s1787_s15, %s2117_s15   ;;  %s1708_s14 = sphi %s1785_s14, %s2116_s14   ;;  %s1704_s13 = sphi %s1783_s13, %s2115_s13  }
   0xc   : > { %s1331_s20 = sadd.s32 4294967294, %s1724_s18   ;;  %s39_s21 = sadd.s32 1, %s1720_s17 }
   0xd   : > { %s261_s22 = sadd.s32 1, %s1712_s15  ;;  %p41_p0 = scmp.ge.s32.totalorder %s39_s21, 2 }
   0xe   : > { %p271_p1 = scmp.ne.s32.totalorder %s1712_s15, %s1708_s14  ;;  %p272_p2 = scmp.eq.s32.totalorder %s1330_s19, 1 }
   0xf   : > { %p277_p3 = scmp.ne.s32.totalorder %s1708_s14, %s1704_s13  ;;  %s2119_s21 = smov (%p41_p0, %s39_s21), 0 }
  0x10   : > { %2106 = sst [smem:[#allocation9_spill]] %s2119_s21  ;;  %p1823_p4 = por %p272_p2, %p271_p1 }
  0x11   : > { %p278_p5 = scmp.eq.s32.totalorder %s1331_s20, 1  ;;  %s256_s24 = ssub.s32 %s1720_s17, %s2119_s21 }
  0x12   : > { %p1334_p6 = scmp.ge.s32.totalorder %s1724_s18, 1  ;;  %p259_p7 = scmp.eq.s32.totalorder %s256_s24, 0 }
  0x13   : > { %p1830_p8 = por %p278_p5, %p277_p3  ;;  %p373_p9 = scmp.lt.s32.totalorder %s1724_s18, 3 }
  0x14   : > { %s1836_s26 = scalar_select %p259_p7, %s1712_s15, %s261_s22  }
  0x15   : > { %p374_p10 = pnand %p1334_p6, %p373_p9 }
  0x16   : > { %p433_p11 = scmp.lt.s32.totalorder (!%p374_p10), %s1716_s16, 1  ;;  %s2109_s0 = sld [smem:[#allocation10_spill]] (!%p374_p10) }
  0x17   : > { %377 = sbr.rel (%p374_p10) target bundleno = 2307 (0x903), region = 56  ;;  %s2110_s1 = sld [smem:[#allocation11_spill]] (!%p374_p10) }
  0x18   : > { %s2111_s2 = sld [smem:[#allocation12_spill]] (!%p374_p10)  ;;  %s1920_s30 = sand.u32 (!%p374_p10), 1, %s1708_s14  }
  0x19   : > { %s2112_s3 = sld [smem:[#allocation13_spill]] (!%p374_p10)  ;;  %s1534_s19 = sshll.u32 (!%p374_p10), %s1716_s16, 4 }
  0x1a   : > { %s1178_s27 = scalar_lea.hbm (!%p374_p10), %s2098_s10, %s1534_s19 }
  0x1b   : > { %s1181_s28 = sshll.u32 (!%p374_p10), %s1178_s27, 4  ;;  %s1182_s28 = int_to_ptr.hbm [resolvable:$true] %s1181_s28 }
  0x1c   : > { %v1511_v0 = vld [vmem:[%s2092_s4 + $0x8] sm:$0xff]  ;;  %v1510_v2 = vld [vmem:[%s2092_s4] sm:$0xff]  ;;  %s434_s22 = scalar_select %p433_p11, %s1716_s16, 1  ;;  %vm477_vm0 = vcmask 261120   ;;  %vm561_vm1 = vcmask 64512   ;;  %v1519_v15 = vld [vmem:[%s2093_s5 + $0x18] sm:$0xff] }
  0x1d   : > { %v1513_v1 = vld [vmem:[%s2093_s5 + $0x8] sm:$0xff]  ;;  %487 = vmatpush.bf16.msra.mxu0 %v1511_v0  ;;  %v1512_v3 = vld [vmem:[%s2093_s5] sm:$0xff]  ;;  %v1518_v23 = vld [vmem:[%s2093_s5 + $0x10] sm:$0xff]  ;;  %vm598_vm2 = vcmask 1043456   ;;  %vm593_vm3 = vcmask 60416  }
  0x1e   : > { %520 = vmatpush.bf16.msra.mxu1 %v1513_v1  ;;  %s1852_s24 = sshll.u32 %s434_s22, 2  ;;  %v1515_v13 = vld [vmem:[%s2094_s6 + $0x8] sm:$0xff]  ;;  %v1514_v14 = vld [vmem:[%s2094_s6] sm:$0xff]  ;;  %v1517_v24 = vld [vmem:[%s2092_s4 + $0x18] sm:$0xff] }
  0x1f   : > { %s439_s29 = scalar_lea.vmem %s2109_s0, %s1852_s24  ;;  %s443_s17 = scalar_lea.vmem %s2110_s1, %s1852_s24  ;;  %553 = vmatpush.bf16.msra.mxu2 %v1515_v13  ;;  %v1516_v25 = vld [vmem:[%s2092_s4 + $0x10] sm:$0xff]  ;;  %v1521_v41 = vld [vmem:[%s2094_s6 + $0x18] sm:$0xff]  ;;  %v616_v48 = vld [vmem:[%s2095_s7] sm:$0xf] }
  0x20   : > { %v1862_v4 = vld [vmem:[%s439_s29] sm:$0xf]  ;;  %s447_s22 = scalar_lea.vmem %s2111_s2, %s1852_s24  ;;  %v1520_v42 = vld [vmem:[%s2094_s6 + $0x10] sm:$0xff]  ;;  %v788_v49 = vsel %vm598_vm2, %v616_v48, 0  ;;  %s1151_s29 = scalar_lea.sflag [#allocation5], %s1920_s30 }
  0x21   : > { %488 = vmatpush.bf16.msra.mxu0 %v1510_v2  ;;  %v1864_v5 = vld [vmem:[%s443_s17] sm:$0xf]  ;;  %s454_s17 = scalar_lea.vmem %s2112_s3, %s1852_s24  ;;  %v1528_v48 = vld [vmem:[%s2092_s4 + $0x30] sm:$0xff]  ;;  %s1634_s1 = scalar_lea.hbm %s2098_s10, 32 }
  0x22   : > { %521 = vmatpush.bf16.msra.mxu1 %v1512_v3  ;;  %v1885_v16 = vld [vmem:[%s447_s22] sm:$0xf] }
  0x23   : > { %554 = vmatpush.bf16.msra.mxu2 %v1514_v14  ;;  %v456_v17 = vld [vmem:[%s454_s17] sm:$0xf]  ;;  %s1336_s17 = sshll.u32 %s1920_s30, 4  ;;  %v1412_v14 = vld [vmem:[%s2095_s7 + $0x4] sm:$0xf] }
  0x24   : > { %1349 = vmatmul.msk.bf16.vlgmr.msra.gmra.mxu0 %vm477_vm0, %v1862_v4  ;;  %v1893_v18 = vunpack.c.l.bf16 %v456_v17  ;;  %s1926_s21 = scalar_lea.vmem [#allocation4], %s1336_s17  ;;  %s1628_s17 = sshra.s32 %s1182_s28, 4  ;;  %s1629_s17 = int_to_ptr.hbm [resolvable:$true] %s1628_s17 }
  0x25   : > { %1358 = vmatmul.msk.bf16.vlgmr.msra.gmra.mxu1 %vm477_vm0, %v1864_v5  ;;  %s1179_s24 = sshll.u32 %s1926_s21, 4  ;;  %s1630_s11 = scalar_lea.hbm %s1629_s17, 16  ;;  %s1180_s24 = int_to_ptr.vmem [resolvable:$true] %s1179_s24 }
  0x26   : > { %1367 = vmatmul.msk.bf16.vlgmr.msra.gmra.mxu2 %vm477_vm0, %v1885_v16  ;;  %640 = vmatpush.bf16.msrb.mxu1 %v1517_v24  ;;  %p1631_p12 = scmp.ne.s32.totalorder %s1629_s17, %s1630_s11  ;;  %p1635_p1 = scmp.lt.s32.totalorder %s1629_s17, %s2098_s10 }
  0x27   : > { %671 = vmatpush.bf16.msrb.mxu2 %v1519_v15  ;;  %v769_v15 = vsel %vm598_vm2, %v1412_v14, 0  ;;  %p1636_p2 = scmp.lt.s32.totalorder %s1634_s1, %s1630_s11 }
  0x28   : > { %p1632_p13 = pnand %p1631_p12, %p1823_p4 }
  0x29   : > { %p1637_p3 = por %p1636_p2, %p1635_p1 }
  0x2a   : > { %641 = vmatpush.bf16.msrb.mxu1 %v1516_v25  ;;  %p1633_p0 = pneg %p1632_p13 }
  0x2b   : > { %672 = vmatpush.bf16.msrb.mxu2 %v1518_v23 }
  0x2c   : > { %p1638_p5 = pnand %p1637_p3, %p1633_p0 }
  0x2f   : > { %778 = vmatpush.bf16.msra.mxu2 %v769_v15 }
  0x35   : > { %1382 = vmatmul.msk.bf16.vlgmr.msrb.gmra.mxu1 %vm477_vm0, %v1862_v4 }
  0x36   : > { %1395 = vmatmul.msk.bf16.vlgmr.msrb.gmra.mxu2 %vm477_vm0, %v1864_v5 }
  0xa1   : > { %v490_v6 = vpop.f32.mrf.mxu0 }
  0xa2   : > { %v523_v7 = vpop.f32.mrf.mxu1  ;;  %v494_v10 = vpack.c.bf16 %v490_v6, %v490_v6  ;;  %v1525_v6 = vld [vmem:[%s2093_s5 + $0x28] sm:$0xff] }
  0xa3   : > { %v527_v8 = vpack.c.bf16 %v523_v7, %v523_v7  ;;  %v1524_v7 = vld [vmem:[%s2093_s5 + $0x20] sm:$0xff] }
  0xa5   : > { %v566_v9 = vsel %vm561_vm1, %v527_v8, 0  ;;  %v1523_v8 = vld [vmem:[%s2092_s4 + $0x28] sm:$0xff] }
  0xa6   : > { %575 = vmatpush.bf16.xpose.msra.mxu3 %v566_v9  ;;  %v1522_v9 = vld [vmem:[%s2092_s4 + $0x20] sm:$0xff] }
  0xa9   : > { %v492_v11 = vpop.f32.mrf.mxu0  ;;  %v556_v26 = vpop.f32.mrf.mxu2 }
  0xaa   : > { %v525_v12 = vpop.f32.mrf.mxu1  ;;  %v560_v33 = vpack.c.bf16 %v556_v26, %v556_v26 }
  0xac   : > { %v600_v34 = vsel %vm598_vm2, %v560_v33, 0 }
  0xad   : > { %1368 = vmatmul.msk.bf16.vlgmr.msra.gmra.mxu3 %vm561_vm1, %v494_v10  ;;  %609 = vmatpush.bf16.msrb.mxu0 %v600_v34 }
  0xae   : > { %702 = vmatpush.bf16.msrb.mxu3 %v1521_v41 }
  0xb1   : > { %v558_v30 = vpop.f32.mrf.mxu2 }
  0xb2   : > { %v643_v38 = vpop.f32.mrf.mxu1  ;;  %703 = vmatpush.bf16.msrb.mxu3 %v1520_v42  ;;  %v1526_v30 = vld [vmem:[%s2094_s6 + $0x20] sm:$0xff] }
  0xb3   : > { %v647_v47 = vpack.c.bf16 %v643_v38, %v643_v38 }
  0xb6   : > { %797 = vmatpush.bf16.msra.mxu3 %v788_v49  ;;  %v1457_v49 = vld [vmem:[%s2095_s7 + $0x8] sm:$0xf] }
  0xb9   : > { %v674_v35 = vpop.f32.mrf.mxu2 }
  0xba   : > { %v678_v36 = vpack.c.bf16 %v674_v35, %v674_v35  ;;  %v645_v40 = vpop.f32.mrf.mxu1 }
  0xbc   : > { %v714_v37 = vsel %vm561_vm1, %v678_v36, 0  ;;  %v1531_v36 = vld [vmem:[%s2093_s5 + $0x38] sm:$0xff] }
  0xbd   : > { %723 = vmatpush.bf16.xpose.msra.mxu0 %v714_v37  ;;  %1408 = vmatmul.msk.bf16.vlgmr.msrb.gmra.mxu3 %vm477_vm0, %v1885_v16 }
  0xc1   : > { %v676_v39 = vpop.f32.mrf.mxu2 }
 0x130   : > { %v577_v19 = vpop.f32.mrf.mxu3 }
 0x131   : > { %v578_v20 = vadd.f32 %v577_v19, %v1893_v18 }
 0x133   : > { %v581_v21 = vsel %vm561_vm1, %v578_v20, -inf }
 0x134   : > { %582 = vmax.xlane.f32.xlu0 %v581_v21 }
 0x138   : > { %v579_v22 = vpop.f32.mrf.mxu3 }
 0x140   : > { %v705_v50 = vpop.f32.mrf.mxu3 }
 0x141   : > { %v709_v52 = vpack.c.bf16 %v705_v50, %v705_v50  ;;  %v955_v50 = vsel %vm598_vm2, %v1457_v49, 0 }
 0x143   : > { %v747_v54 = vsel %vm598_vm2, %v709_v52, 0 }
 0x144   : > { %756 = vmatpush.bf16.msra.mxu1 %v747_v54 }
 0x148   : > { %v707_v55 = vpop.f32.mrf.mxu3  ;;  %857 = vmatpush.bf16.msrb.mxu1 %v1525_v6 }
 0x14c   : > { %858 = vmatpush.bf16.msrb.mxu1 %v1524_v7 }
 0x1a7   : > { %v583_v27 = vpop.xlane.xlu0 %582 }
 0x1a8   : > { %v584_v28 = vsub.f32 %v578_v20, %v583_v27 }
 0x1aa   : > { %v585_v29 = vmul.f32 1.442695, %v584_v28 }
 0x1ac   : > { %1598 = vpow2.f32 %v585_v29  ;;  %v1527_v29 = vld [vmem:[%s2094_s6 + $0x28] sm:$0xff] }
 0x1ad   : > { %888 = vmatpush.bf16.msrb.mxu2 %v1527_v29 }
 0x1b1   : > { %889 = vmatpush.bf16.msrb.mxu2 %v1526_v30 }
 0x1b2   : > { %v1599_v31 = vpop.eup %1598 }
 0x1b3   : > { %v587_v32 = vsel %vm561_vm1, %v1599_v31, 0.0 }
 0x1b4   : > { %588 = vadd.xlane.f32.xlu0 %v587_v32 }
 0x227   : > { %v589_v43 = vpop.xlane.xlu0 %588 }
 0x228   : > { %1600 = vrcp.f32 %v589_v43 }
 0x22e   : > { %v1601_v44 = vpop.eup %1600 }
 0x22f   : > { %v591_v45 = vmul.f32 %v1601_v44, %v1599_v31 }
 0x231   : > { %v592_v46 = vpack.c.bf16 %v591_v45, %v591_v45 }
 0x233   : > { %1369 = vmatmul.msk.bf16.vlgmr.msrb.gmra.mxu0 %vm561_vm1, %v592_v46  ;;  %594 = vst.msk [vmem:[%s1926_s21] sm:$0xf] %vm593_vm3, %v592_v46  ;;  %v1530_v46 = vld [vmem:[%s2093_s5 + $0x30] sm:$0xff] }
 0x234   : > { %826 = vmatpush.bf16.msrb.mxu0 %v1523_v8 }
 0x238   : > { %827 = vmatpush.bf16.msrb.mxu0 %v1522_v9 }
 0x243   : > { %1409 = vmatmul.msk.bf16.vlgmr.msra.gmra.mxu0 %vm561_vm1, %v647_v47  ;;  %v1529_v47 = vld [vmem:[%s2092_s4 + $0x38] sm:$0xff] }
 0x253   : > { %1427 = vmatmul.msk.bf16.vlgmr.msrb.gmra.mxu0 %vm477_vm0, %v1862_v4 }
 0x2b0   : > { %v611_v51 = vpop.f32.mrf.mxu0 }
 0x2b1   : > { %v615_v53 = vpack.c.bf16 %v611_v51, %v611_v51 }
 0x2b3   : > { %1414 = vmatmul.msk.bf16.vlgmr.msra.gmra.mxu3 %vm561_vm1, %v615_v53 }
 0x2b8   : > { %v613_v56 = vpop.f32.mrf.mxu0 }
 0x2c0   : > { %v725_v57 = vpop.f32.mrf.mxu0 }
 0x2c1   : > { %v726_v58 = vadd.f32 %v725_v57, %v1893_v18 }
 0x2c3   : > { %v729_v59 = vsel %vm561_vm1, %v726_v58, -inf }
 0x2c4   : > { %730 = vmax.xlane.f32.xlu1 %v729_v59 }
 0x2c8   : > { %v727_v60 = vpop.f32.mrf.mxu0 }
 0x2d0   : > { %v829_v17 = vpop.f32.mrf.mxu0 }
 0x2d1   : > { %v833_v26 = vpack.c.bf16 %v829_v17, %v829_v17 }
 0x2d8   : > { %v831_v19 = vpop.f32.mrf.mxu0 }
 0x336   : > { %v1939_v61 = vpop.f32.mrf.mxu3 }
 0x337   : > { %v731_v62 = vpop.xlane.xlu1 %730 }
 0x338   : > { %v732_v63 = vsub.f32 %v726_v58, %v731_v62 }
 0x33a   : > { %v733_v0 = vmul.f32 1.442695, %v732_v63 }
 0x33c   : > { %1602 = vpow2.f32 %v733_v0  ;;  %v1533_v0 = vld [vmem:[%s2094_s6 + $0x38] sm:$0xff] }
 0x33e   : > { %v801_v1 = vpop.f32.mrf.mxu3 }
 0x33f   : > { %v1532_v1 = vld [vmem:[%s2094_s6 + $0x30] sm:$0xff] }
 0x342   : > { %v1603_v2 = vpop.eup %1602 }
 0x343   : > { %v735_v3 = vsel %vm561_vm1, %v1603_v2, 0.0 }
 0x344   : > { %736 = vadd.xlane.f32.xlu1 %v735_v3 }
 0x3b7   : > { %v737_v10 = vpop.xlane.xlu1 %736 }
 0x3b8   : > { %1604 = vrcp.f32 %v737_v10 }
 0x3be   : > { %v1605_v11 = vpop.eup %1604 }
 0x3bf   : > { %v739_v12 = vmul.f32 %v1605_v11, %v1603_v2 }
 0x3c1   : > { %v740_v13 = vpack.c.bf16 %v739_v12, %v739_v12 }
 0x3c3   : > { %1411 = vmatmul.msk.bf16.vlgmr.msra.gmra.mxu1 %vm561_vm1, %v740_v13  ;;  %1410 = vst.msk [vmem:[%s1926_s21 + $0x4] sm:$0xf] %vm593_vm3, %v740_v13 }
 0x3c4   : > { %964 = vmatpush.bf16.msra.mxu1 %v955_v50 }
 0x3d3   : > { %1440 = vmatmul.msk.bf16.vlgmr.msrb.gmra.mxu1 %vm477_vm0, %v1864_v5 }
 0x440   : > { %v758_v20 = vpop.f32.mrf.mxu1 }
 0x441   : > { %v762_v21 = vpack.c.bf16 %v758_v20, %v758_v20 }
 0x443   : > { %1413 = vmatmul.msk.bf16.vlgmr.msra.gmra.mxu2 %vm561_vm1, %v762_v21 }
 0x444   : > { %994 = vmatpush.bf16.msra.mxu2 %v1529_v47 }
 0x448   : > { %v760_v22 = vpop.f32.mrf.mxu1  ;;  %995 = vmatpush.bf16.msra.mxu2 %v1528_v48 }
 0x450   : > { %v860_v23 = vpop.f32.mrf.mxu1 }
 0x451   : > { %v864_v24 = vpack.c.bf16 %v860_v23, %v860_v23 }
 0x453   : > { %v900_v25 = vsel %vm561_vm1, %v864_v24, 0  ;;  %1453 = vmatmul.msk.bf16.vlgmr.msrb.gmra.mxu2 %vm477_vm0, %v1885_v16 }
 0x454   : > { %909 = vmatpush.bf16.xpose.msrb.mxu3 %v900_v25 }
 0x458   : > { %v862_v27 = vpop.f32.mrf.mxu1 }
 0x45b   : > { %1454 = vmatmul.msk.bf16.vlgmr.msrb.gmra.mxu3 %vm561_vm1, %v833_v26 }
 0x45c   : > { %1025 = vmatpush.bf16.msra.mxu3 %v1531_v36 }
 0x460   : > { %1026 = vmatpush.bf16.msra.mxu3 %v1530_v46 }
 0x463   : > { %1471 = vmatmul.msk.bf16.vlgmr.msra.gmra.mxu2 %vm477_vm0, %v1862_v4 }
 0x46b   : > { %1484 = vmatmul.msk.bf16.vlgmr.msra.gmra.mxu3 %vm477_vm0, %v1864_v5 }
 0x4c6   : > { %v780_v28 = vpop.f32.mrf.mxu2 }
 0x4c7   : > { %v800_v2 = vadd.f32 %v1939_v61, %v780_v28 }
 0x4ce   : > { %v782_v31 = vpop.f32.mrf.mxu2 }
 0x4d6   : > { %v891_v37 = vpop.f32.mrf.mxu2 }
 0x4d7   : > { %v895_v38 = vpack.c.bf16 %v891_v37, %v891_v37 }
 0x4d9   : > { %v933_v40 = vsel %vm598_vm2, %v895_v38, 0 }
 0x4da   : > { %942 = vmatpush.bf16.msra.mxu0 %v933_v40 }
 0x4de   : > { %v911_v32 = vpop.f32.mrf.mxu3  ;;  %v893_v43 = vpop.f32.mrf.mxu2  ;;  %1056 = vmatpush.bf16.msrb.mxu0 %v1533_v0 }
 0x4df   : > { %v912_v33 = vadd.f32 %v911_v32, %v1893_v18 }
 0x4e1   : > { %v915_v34 = vsel %vm561_vm1, %v912_v33, -inf }
 0x4e2   : > { %916 = vmax.xlane.f32.xlu2 %v915_v34  ;;  %1057 = vmatpush.bf16.msrb.mxu0 %v1532_v1 }
 0x4e6   : > { %v913_v35 = vpop.f32.mrf.mxu3  ;;  %v997_v58 = vpop.f32.mrf.mxu2 }
 0x4e7   : > { %v1001_v63 = vpack.c.bf16 %v997_v58, %v997_v58 }
 0x4ee   : > { %v1028_v54 = vpop.f32.mrf.mxu3  ;;  %v999_v59 = vpop.f32.mrf.mxu2 }
 0x4ef   : > { %v1032_v55 = vpack.c.bf16 %v1028_v54, %v1028_v54 }
 0x4f1   : > { %v1068_v56 = vsel %vm561_vm1, %v1032_v55, 0 }
 0x4f2   : > { %1077 = vmatpush.bf16.xpose.msrb.mxu1 %v1068_v56 }
 0x4f6   : > { %v1030_v57 = vpop.f32.mrf.mxu3 }
 0x555   : > { %v917_v39 = vpop.xlane.xlu2 %916 }
 0x556   : > { %v918_v41 = vsub.f32 %v912_v33, %v917_v39 }
 0x558   : > { %v919_v42 = vmul.f32 1.442695, %v918_v41 }
 0x55a   : > { %1606 = vpow2.f32 %v919_v42 }
 0x560   : > { %v1607_v44 = vpop.eup %1606 }
 0x561   : > { %v921_v45 = vsel %vm561_vm1, %v1607_v44, 0.0 }
 0x562   : > { %922 = vadd.xlane.f32.xlu2 %v921_v45 }
 0x5d5   : > { %v923_v51 = vpop.xlane.xlu2 %922 }
 0x5d6   : > { %1608 = vrcp.f32 %v923_v51 }
 0x5dc   : > { %v1609_v52 = vpop.eup %1608 }
 0x5dd   : > { %v925_v5 = vmul.f32 %v1609_v52, %v1607_v44 }
 0x5df   : > { %v926_v53 = vpack.c.bf16 %v925_v5, %v925_v5 }
 0x5e1   : > { %1456 = vmatmul.msk.bf16.vlgmr.msra.gmra.mxu0 %vm561_vm1, %v926_v53  ;;  %1455 = vst.msk [vmem:[%s1926_s21 + $0x8] sm:$0xf] %vm593_vm3, %v926_v53 }
 0x5f1   : > { %1497 = vmatmul.msk.bf16.vlgmr.msrb.gmra.mxu0 %vm477_vm0, %v1885_v16 }
 0x65e   : > { %v944_v60 = vpop.f32.mrf.mxu0 }
 0x65f   : > { %v948_v4 = vpack.c.bf16 %v944_v60, %v944_v60 }
 0x661   : > { %1458 = vmatmul.msk.bf16.vlgmr.msra.gmra.mxu1 %vm561_vm1, %v948_v4 }
 0x666   : > { %v946_v62 = vpop.f32.mrf.mxu0 }
 0x66e   : > { %v1059_v12 = vpop.f32.mrf.mxu0 }
 0x66f   : > { %v1063_v13 = vpack.c.bf16 %v1059_v12, %v1059_v12 }
 0x671   : > { %1498 = vmatmul.msk.bf16.vlgmr.msrb.gmra.mxu1 %vm561_vm1, %v1001_v63  ;;  %v1101_v14 = vsel %vm598_vm2, %v1063_v13, 0 }
 0x672   : > { %1110 = vmatpush.bf16.msrb.mxu2 %v1101_v14 }
 0x676   : > { %v1061_v61 = vpop.f32.mrf.mxu0 }
 0x6de   : > { %v966_v3 = vpop.f32.mrf.mxu1 }
 0x6df   : > { %v2013_v6 = vadd.f32 %v966_v3, %v800_v2 }
 0x6e6   : > { %v968_v7 = vpop.f32.mrf.mxu1 }
 0x6ee   : > { %v1079_v8 = vpop.f32.mrf.mxu1 }
 0x6ef   : > { %v1080_v9 = vadd.f32 %v1079_v8, %v1893_v18  ;;  %v1501_v18 = vld [vmem:[%s2095_s7 + $0xc] sm:$0xf] }
 0x6f0   : > { %v1123_v21 = vsel %vm598_vm2, %v1501_v18, 0 }
 0x6f1   : > { %v1083_v10 = vsel %vm561_vm1, %v1080_v9, -inf  ;;  %1132 = vmatpush.bf16.msrb.mxu3 %v1123_v21 }
 0x6f2   : > { %1084 = vmax.xlane.f32.xlu0 %v1083_v10 }
 0x6f6   : > { %v1081_v11 = vpop.f32.mrf.mxu1 }
 0x765   : > { %v1085_v15 = vpop.xlane.xlu0 %1084 }
 0x766   : > { %v1086_v17 = vsub.f32 %v1080_v9, %v1085_v15 }
 0x768   : > { %v1087_v19 = vmul.f32 1.442695, %v1086_v17 }
 0x76a   : > { %1610 = vpow2.f32 %v1087_v19 }
 0x770   : > { %v1611_v16 = vpop.eup %1610 }
 0x771   : > { %v1089_v20 = vsel %vm561_vm1, %v1611_v16, 0.0 }
 0x772   : > { %1090 = vadd.xlane.f32.xlu1 %v1089_v20 }
 0x7e5   : > { %v1091_v22 = vpop.xlane.xlu1 %1090 }
 0x7e6   : > { %1612 = vrcp.f32 %v1091_v22 }
 0x7ec   : > { %v1613_v23 = vpop.eup %1612 }
 0x7ed   : > { %v1093_v24 = vmul.f32 %v1613_v23, %v1611_v16 }
 0x7ef   : > { %v1094_v25 = vpack.c.bf16 %v1093_v24, %v1093_v24 }
 0x7f1   : > { %1500 = vmatmul.msk.bf16.vlgmr.msrb.gmra.mxu2 %vm561_vm1, %v1094_v25  ;;  %1499 = vst.msk [vmem:[%s1926_s21 + $0xc] sm:$0xf] %vm593_vm3, %v1094_v25 }
 0x874   : > { %v1112_v26 = vpop.f32.mrf.mxu2 }
 0x875   : > { %v1116_v27 = vpack.c.bf16 %v1112_v26, %v1112_v26 }
 0x877   : > { %1502 = vmatmul.msk.bf16.vlgmr.msrb.gmra.mxu3 %vm561_vm1, %v1116_v27 }
 0x87c   : > { %v1114_v28 = vpop.f32.mrf.mxu2 }
 0x87d   : > { %1641 = shalt.err (!%p1638_p5)
}
 0x87e   : > { %s1726_s19 = smov 64   ;;  %s1727_s20 = smov 4   ;;  %v1597_v29 = vld [vmem:[%s2096_s8] ss:$0 sm:$0xff] }
 0x87f   : > { %1536 = dma.vmem_to_hbm [thread:$0]  (%p1823_p4), %s1180_s24, 256, %s1182_s28, %s1151_s29, %s1726_s19, %s1726_s19, %s1727_s20  }
 0x880   : > { %s1335_s22 = sshll.u32 %s1920_s30, 3  ;;  %s1505_s27 = sshll.u32 %s1716_s16, 3 }
 0x881   : > { %s1162_s3 = scalar_lea.hbm %s2097_s9, %s1505_s27  ;;  %s425_s1 = scalar_lea.vmem [#allocation2], %s1335_s22 }
 0x882   : > { %s1164_s11 = sshll.u32 %s425_s1, 4  ;;  %s1166_s21 = sshll.u32 %s1162_s3, 4  ;;  %s1165_s11 = int_to_ptr.vmem [resolvable:$true] %s1164_s11  ;;  %s1167_s21 = int_to_ptr.hbm [resolvable:$true] %s1166_s21 }
 0x883   : > { %s1146_s16 = scalar_lea.sflag [#allocation3], %s1920_s30  ;;  %s1656_s24 = sshra.s32 %s1167_s21, 4  ;;  %s1657_s24 = int_to_ptr.hbm [resolvable:$true] %s1656_s24 }
 0x884   : > { %s1658_s28 = scalar_lea.hbm %s1657_s24, 8  ;;  %s1662_s20 = scalar_lea.hbm %s2097_s9, 16 }
 0x885   : > { %p1659_p6 = scmp.ne.s32.totalorder %s1657_s24, %s1658_s28  ;;  %p1663_p10 = scmp.lt.s32.totalorder %s1657_s24, %s2097_s9 }
 0x886   : > { %p1664_p11 = scmp.lt.s32.totalorder %s1662_s20, %s1658_s28 }
 0x887   : > { %p1660_p7 = pnand %p1659_p6, %p1823_p4 }
 0x888   : > { %p1665_p12 = por %p1664_p11, %p1663_p10 }
 0x889   : > { %p1661_p9 = pneg %p1660_p7 }
 0x88b   : > { %p1666_p13 = pnand %p1665_p12, %p1661_p9 }
 0x8fa   : > { %v1134_v30 = vpop.f32.mrf.mxu3 }
 0x8fb   : > { %v1138_v31 = vadd.f32 %v1134_v30, %v2013_v6 }
 0x8fd   : > { %v1143_v32 = vadd.f32 %v1597_v29, %v1138_v31 }
 0x8ff   : > { %1144 = vst.msk [vmem:[%s425_s1] sm:$0xff] %vm477_vm0, %v1143_v32 }
 0x900   : > { %1669 = shalt.err (!%p1666_p13)
}
 0x901   : > { %1535 = dma.vmem_to_hbm [thread:$0]  (%p1823_p4), %s1165_s11, 128, %s1167_s21, %s1146_s16  }
 0x902   : > { %v1136_v33 = vpop.f32.mrf.mxu3 }
 0x903 PF: > { %p1546_p0 = scmp.ge.s32.totalorder %s1724_s18, 2  ;;  %s1196_s30 = sand.u32 1, %s1704_s13  }
 0x904   : > { %s1197_s27 = scalar_lea.sflag [#allocation3], %s1196_s30 }
 0x905   : > { %p1540_p1 = pnand %p1546_p0, %p1830_p8 }
 0x907   : > { %p1541_p2 = pneg %p1540_p1 }
 0x909   : > { %1695 = dma.done.wait (%p1541_p2), %s1197_s27, 128  }
 0x90a   : > { %1697 = vsyncadd (%p1541_p2), %s1197_s27, 4294967168  ;;  %s1207_s0 = scalar_lea.sflag [#allocation5], %s1196_s30 }
 0x90b   : > { %1699 = dma.done.wait (%p1541_p2), %s1207_s0, 256  }
 0x90c   : > { %1701 = vsyncadd (%p1541_p2), %s1207_s0, 4294967040  ;;  %s27_s18 = sadd.s32 1, %s1724_s18   ;;  %s2113_s16 = sld [smem:[#allocation8_spill]] }
 0x90d   : > { %p24_p3 = scmp.ge.s32.totalorder %s27_s18, 4   ;;  %s2114_s17 = sld [smem:[#allocation9_spill]] }
 0x90e   : > { %s2115_s13 = smov %s1708_s14  ;;  %s2116_s14 = smov %s1712_s15 }
 0x90f   : > { %s2117_s15 = smov %s1836_s26  ;;  %26 = sbr.rel (!%p24_p3) target bundleno = 11 (0xb), region = 132 }
 0x914   :  { %1213 = vsyncpa [#allocation3], 1 }
 0x915   :  { %1215 = vsyncpa [#allocation3 + $0x1], 1 }
 0x916   :  { %1216 = vsyncpa [#allocation5], 1 }
 0x917   :  { %1218 = vsyncpa [#allocation5 + $0x1], 1 }

</bundles_post_ra>
